<compile_context>
chip_gen: v5e
topology: v5e:2x2
jax: 0.10.0
libtpu: 0.0.40
codegen_flags: <defaults>
</compile_context>

<pallas_src>
import jax
import jax.numpy as jnp
from jax import lax
from jax.experimental import pallas as pl
from jax.experimental.pallas import tpu as pltpu


# ----------------------------------------------------------------------------- helpers

def _round_up(x: int, n: int) -> int:
    return ((x + n - 1) // n) * n


def _pad2d(a, shape):
    pads = [(0, t - s) for s, t in zip(a.shape, shape)]
    if any(p[1] for p in pads):
        a = jnp.pad(a, pads)
    return a


def _vmem_budget_bytes() -> int:
    """Generation-aware VMEM budget: ~75% of physical VMEM.
    ~96 MiB on 128 MiB parts (v5e/v6e), ~48 MiB on v7x (64 MiB)."""
    cap = 128 << 20
    try:
        info = pltpu.get_tpu_info()
        cap = int(getattr(info, "vmem_capacity_bytes", cap) or cap)
    except Exception:
        pass
    if cap <= 0:
        cap = 128 << 20
    return max((cap * 3) // 4, 32 << 20)


def _largest_divisor_leq(total: int, cap: int) -> int:
    cap = max(1, min(cap, total))
    for d in range(cap, 0, -1):
        if total % d == 0:
            return d
    return 1


def _pick_lane_tile(total_units: int, cap_units: int) -> int:
    """Tile size (in 128-lane units) that divides total_units when a reasonable
    divisor exists (avoids re-padding prepared operands / output slicing);
    falls back to the cap (accepting padding) for pathological sizes."""
    cap_units = max(1, cap_units)
    limit = min(cap_units, total_units)
    d = _largest_divisor_leq(total_units, limit)
    if d * 4 < limit:  # poor divisor structure -> pad instead
        return limit
    return d


def _pick_tiles(m, e_units, v_units, cb, ob, budget):
    """Returns (tm, tk, tn, ktiled). tk/tn are multiples of 128."""
    if m <= 1024:
        tm = _round_up(max(m, 1), 16)       # >=16 rows: full bf16 sublane pack
    elif m % 1024 == 0:
        tm = 1024
    else:
        tm = 512
    n_m = _round_up(m, tm) // tm

    MAX_TN_UNITS = 16   # 2048-lane weight/output tiles
    MAX_TK_UNITS = 32   # 4096-lane contraction tiles when K-tiled

    def tn_cap_units(tk_units, with_acc):
        tk = tk_units * 128
        x_cost = 2 * tm * tk * cb                        # x tile, double-buffered
        per_lane = (2 * tk * cb                          # weight tile, double-buffered
                    + 2 * tm * ob                        # output tile, double-buffered
                    + 2 * 4                              # bias tile (f32), double-buffered
                    + (tm * 4 if with_acc else 0))       # f32 accumulator scratch
        rem = budget - x_cost
        return max(0, rem // (128 * per_lane))

    cap = tn_cap_units(e_units, with_acc=False)
    if cap >= 2 or (cap >= 1 and v_units == 1):
        # Collapse the contraction axis: single K pass, no accumulator RMW.
        tk_units, ktiled = e_units, False
    else:
        # K-tiled fallback (very large E or tight VMEM).
        ktiled = True
        tk_units = _pick_lane_tile(e_units, MAX_TK_UNITS)
        while tk_units > 1 and tn_cap_units(tk_units, True) < 1:
            tk_units = _pick_lane_tile(e_units, max(1, tk_units // 2))
        cap = tn_cap_units(tk_units, with_acc=True)

    tn_units = _pick_lane_tile(v_units, max(1, min(cap, MAX_TN_UNITS)))

    # v7x megacore: with a single M tile, keep >=2 vocab tiles so both
    # TensorCores get work (near-neutral on single-TC v5e/v6e).
    if n_m == 1 and tn_units == v_units and v_units >= 2:
        tn_units = _largest_divisor_leq(v_units, v_units // 2)

    return tm, tk_units * 128, tn_units * 128, ktiled


# ----------------------------------------------------------------------------- kernels

def _linear_kernel_single(x_ref, w_ref, b_ref, o_ref):
    # x:(TM,TK) w:(TN,TK) b:(1,TN) o:(TM,TN); whole contraction in one pass.
    acc = lax.dot_general(
        x_ref[...], w_ref[...],
        dimension_numbers=(((1,), (1,)), ((), ())),   # trans-B -> MXU
        preferred_element_type=jnp.float32,
    )
    o_ref[...] = (acc + b_ref[...]).astype(o_ref.dtype)


def _linear_kernel_ktiled(x_ref, w_ref, b_ref, o_ref, acc_ref):
    # Same as above but with the contraction tiled along the last grid axis,
    # using a resident f32 VMEM accumulator.
    k = pl.program_id(2)

    @pl.when(k == 0)
    def _():
        acc_ref[...] = jnp.zeros_like(acc_ref)

    acc_ref[...] += lax.dot_general(
        x_ref[...], w_ref[...],
        dimension_numbers=(((1,), (1,)), ((), ())),
        preferred_element_type=jnp.float32,
    )

    @pl.when(k == pl.num_programs(2) - 1)
    def _():
        o_ref[...] = (acc_ref[...] + b_ref[...]).astype(o_ref.dtype)


# ----------------------------------------------------------------------------- wrapper

def prepare_dense_decoder_params(weight, bias, compute_dtype=jnp.bfloat16):
    """Pad the (V, E) weight / (V,) bias to 128-aligned shapes and cast the
    weight to the compute dtype ONCE, so the forward pass never re-materializes
    a full-weight copy in HBM."""
    v, e = weight.shape
    v_p0, e_p0 = _round_up(v, 128), _round_up(e, 128)
    w = _pad2d(weight, (v_p0, e_p0)).astype(compute_dtype)
    b = _pad2d(bias.reshape(1, -1).astype(jnp.float32), (1, v_p0))
    return w, b


def _dense_decoder_apply(x, w_pre, b_pre, vocab_size, *, compute_dtype, out_dtype):
    *lead, embed_dim = x.shape
    out_dtype = jnp.dtype(out_dtype) if out_dtype is not None else x.dtype

    m = 1
    for d in lead:
        m *= d
    m = max(m, 1)

    v_p0, e_p0 = w_pre.shape
    assert e_p0 >= embed_dim and v_p0 >= vocab_size

    cb = jnp.dtype(compute_dtype).itemsize
    ob = jnp.dtype(out_dtype).itemsize
    budget = _vmem_budget_bytes()

    tm, tk, tn, ktiled = _pick_tiles(m, e_p0 // 128, v_p0 // 128, cb, ob, budget)

    m_p = _round_up(m, tm)
    e_p = _round_up(e_p0, tk)
    v_p = _round_up(v_p0, tn)

    x_p = _pad2d(x.reshape(m, embed_dim).astype(compute_dtype), (m_p, e_p))
    # Prepared weight/bias normally need no further padding or casting
    # (tiles are chosen as divisors of the prepared, 128-aligned dims).
    w_p = w_pre if w_pre.shape == (v_p, e_p) else _pad2d(w_pre, (v_p, e_p))
    if w_p.dtype != compute_dtype:
        w_p = w_p.astype(compute_dtype)
    b_p = b_pre if b_pre.shape == (1, v_p) else _pad2d(b_pre, (1, v_p))

    n_m = m_p // tm
    n_n = v_p // tn

    if not ktiled:
        # Order the grid so the operand with the larger total re-stream cost is
        # resident across the inner axis (its block index doesn't change there).
        if n_n * (m_p * e_p) <= n_m * (v_p * e_p):
            grid = (n_n, n_m)          # weight streamed once; x re-streamed n_n times
            in_specs = [
                pl.BlockSpec((tm, tk), lambda j, i: (i, 0)),   # x
                pl.BlockSpec((tn, tk), lambda j, i: (j, 0)),   # weight (V, E)
                pl.BlockSpec((1, tn), lambda j, i: (0, j)),    # bias
            ]
            out_spec = pl.BlockSpec((tm, tn), lambda j, i: (i, j))
        else:
            grid = (n_m, n_n)          # x streamed once; weight re-streamed n_m times
            in_specs = [
                pl.BlockSpec((tm, tk), lambda i, j: (i, 0)),
                pl.BlockSpec((tn, tk), lambda i, j: (j, 0)),
                pl.BlockSpec((1, tn), lambda i, j: (0, j)),
            ]
            out_spec = pl.BlockSpec((tm, tn), lambda i, j: (i, j))
        kernel = _linear_kernel_single
        scratch = []
        dims = ("parallel", "parallel")
    else:
        n_k = e_p // tk
        grid = (n_n, n_m, n_k)
        in_specs = [
            pl.BlockSpec((tm, tk), lambda j, i, k: (i, k)),
            pl.BlockSpec((tn, tk), lambda j, i, k: (j, k)),
            pl.BlockSpec((1, tn), lambda j, i, k: (0, j)),
        ]
        out_spec = pl.BlockSpec((tm, tn), lambda j, i, k: (i, j))
        kernel = _linear_kernel_ktiled
        scratch = [pltpu.VMEM((tm, tn), jnp.float32)]
        dims = ("parallel", "parallel", "arbitrary")

    out_p = pl.pallas_call(
        kernel,
        out_shape=jax.ShapeDtypeStruct((m_p, v_p), out_dtype),
        grid_spec=pltpu.PrefetchScalarGridSpec(
            num_scalar_prefetch=0,
            grid=grid,
            in_specs=in_specs,
            out_specs=out_spec,
            scratch_shapes=scratch,
        ),
        compiler_params=pltpu.CompilerParams(
            dimension_semantics=dims,
            vmem_limit_bytes=int(budget),
        ),
    )(x_p, w_p, b_p)

    out2d = out_p
    if m_p != m or v_p != vocab_size:
        out2d = out_p[:m, :vocab_size]
    return out2d.reshape(*lead, vocab_size)


class DenseDecoder:
    """Pallas equivalent of nn.Linear(embed_dim, vocab_size); weight prepared once."""

    def __init__(self, weight, bias, *, compute_dtype=jnp.bfloat16, out_dtype=None):
        self.vocab_size, self.embed_dim = weight.shape
        self.compute_dtype = compute_dtype
        self.out_dtype = out_dtype
        self.weight, self.bias = prepare_dense_decoder_params(weight, bias, compute_dtype)

    def __call__(self, x):
        return _dense_decoder_apply(
            x, self.weight, self.bias, self.vocab_size,
            compute_dtype=self.compute_dtype, out_dtype=self.out_dtype)


def dense_decoder_forward(x, weight, bias, *, compute_dtype=jnp.bfloat16, out_dtype=None):
    """One-shot convenience wrapper: x @ weight.T + bias. Prepares (pads/casts)
    the weight per call; for repeated use build DenseDecoder once instead."""
    w_p, b_p = prepare_dense_decoder_params(weight, bias, compute_dtype)
    return _dense_decoder_apply(x, w_p, b_p, weight.shape[0],
                                compute_dtype=compute_dtype, out_dtype=out_dtype)


def init_dense_decoder_params(key, embed_dim, vocab_size, dtype=jnp.float32):
    """Deterministic init mimicking nn.Linear's uniform(-1/sqrt(fan_in), 1/sqrt(fan_in))."""
    k_w, k_b = jax.random.split(key)
    bound = 1.0 / (embed_dim ** 0.5)
    weight = jax.random.uniform(
        k_w, (vocab_size, embed_dim), dtype=dtype, minval=-bound, maxval=bound)
    bias = jax.random.uniform(
        k_b, (vocab_size,), dtype=dtype, minval=-bound, maxval=bound)
    return weight, bias


if __name__ == "__main__":
    batch, seq, embed_dim, vocab_size = 2, 8, 32, 256

    key = jax.random.PRNGKey(0)
    k_x, k_p = jax.random.split(key)

    x = jax.random.normal(k_x, (batch, seq, embed_dim), dtype=jnp.float32)
    weight, bias = init_dense_decoder_params(k_p, embed_dim, vocab_size)

    # Preferred path: weight prepared (padded + cast to bf16) exactly once.
    decoder = DenseDecoder(weight, bias)
    out = jax.block_until_ready(decoder(x))
    assert out.shape == (batch, seq, vocab_size)

    # Reference with matching bf16 compute / f32 accumulation.
    ref_bf16 = (
        jnp.einsum(
            "bse,ve->bsv",
            x.astype(jnp.bfloat16),
            weight.astype(jnp.bfloat16),
            preferred_element_type=jnp.float32,
        )
        + bias
    ).astype(x.dtype)
    assert jnp.allclose(out, ref_bf16, atol=1e-3, rtol=1e-3)

    # Loose sanity check against the full-f32 PyTorch-equivalent forward
    # (tight enough here because embed_dim is small).
    ref_f32 = x @ weight.T + bias
    assert jnp.allclose(out, ref_f32, atol=5e-2, rtol=5e-2)

    # One-shot wrapper path gives the identical result.
    out2 = jax.block_until_ready(dense_decoder_forward(x, weight, bias))
    assert jnp.allclose(out2, out)

    print("KERNEL_OK")
</pallas_src>

<mosaic_0001>
module attributes {stable_mosaic.version = 11 : i64} {
  func.func @_linear_kernel_single(%arg0: i32, %arg1: i32, %arg2: memref<16x128xbf16, #tpu.memory_space<vmem>>, %arg3: memref<128x128xbf16, #tpu.memory_space<vmem>>, %arg4: memref<1x128xf32, #tpu.memory_space<vmem>>, %arg5: memref<16x128xf32, #tpu.memory_space<vmem>>) attributes {dimension_semantics = [#tpu.dimension_semantics<parallel>, #tpu.dimension_semantics<parallel>], iteration_bounds = array<i64: 2, 1>, scalar_prefetch = 0 : i64, scratch_operands = 0 : i64, tpu.core_type = #tpu.core_type<tc>, window_params = [{transform_indices = @transform_0, window_bounds = array<i64: 16, 128>}, {transform_indices = @transform_1, window_bounds = array<i64: 128, 128>}, {transform_indices = @transform_2, window_bounds = array<i64: 1, 128>}, {transform_indices = @transform_3, window_bounds = array<i64: 16, 128>}]} {
    %c0 = arith.constant 0 : index
    %c0_0 = arith.constant 0 : index
    %0 = vector.load %arg2[%c0, %c0_0] : memref<16x128xbf16, #tpu.memory_space<vmem>>, vector<16x128xbf16>
    %c0_1 = arith.constant 0 : index
    %c0_2 = arith.constant 0 : index
    %1 = vector.load %arg3[%c0_1, %c0_2] : memref<128x128xbf16, #tpu.memory_space<vmem>>, vector<128x128xbf16>
    %cst = arith.constant dense<0.000000e+00> : vector<16x128xf32>
    %2 = tpu.matmul %0, %1, %cst {dimension_numbers = #tpu.dot_dimension_numbers<[1], [1], [0], [0], [0, 0, 1, 0], [], []>} : vector<16x128xbf16>, vector<128x128xbf16>, vector<16x128xf32> -> vector<16x128xf32>
    %c0_3 = arith.constant 0 : index
    %c0_4 = arith.constant 0 : index
    %3 = vector.load %arg4[%c0_3, %c0_4] : memref<1x128xf32, #tpu.memory_space<vmem>>, vector<1x128xf32>
    %4 = vector.broadcast %3 : vector<1x128xf32> to vector<16x128xf32>
    %5 = arith.addf %2, %4 : vector<16x128xf32>
    %c0_5 = arith.constant 0 : index
    %c0_6 = arith.constant 0 : index
    %6 = vector.load %arg5[%c0_5, %c0_6] : memref<16x128xf32, #tpu.memory_space<vmem>>, vector<16x128xf32>
    tpu.vector_store %arg5[%c0_5, %c0_6], %5 {strides = array<i32>} : memref<16x128xf32, #tpu.memory_space<vmem>>, vector<16x128xf32>,
    return
  }
  func.func @transform_0(%arg0: i32, %arg1: i32) -> (i32, i32) {
    %c0_i32 = arith.constant 0 : i32
    %c0_i32_0 = arith.constant 0 : i32
    return %arg1, %c0_i32 : i32, i32
  }
  func.func @transform_1(%arg0: i32, %arg1: i32) -> (i32, i32) {
    %c0_i32 = arith.constant 0 : i32
    %c0_i32_0 = arith.constant 0 : i32
    return %arg0, %c0_i32 : i32, i32
  }
  func.func @transform_2(%arg0: i32, %arg1: i32) -> (i32, i32) {
    %c0_i32 = arith.constant 0 : i32
    %c0_i32_0 = arith.constant 0 : i32
    return %c0_i32, %arg0 : i32, i32
  }
  func.func @transform_3(%arg0: i32, %arg1: i32) -> (i32, i32) {
    %c0_i32 = arith.constant 0 : i32
    return %arg1, %arg0 : i32, i32
  }
}

</mosaic_0001>

<bundles_post_ra>
// kernel: tpu_custom_call.1
= control target key start
LH: loop header
LB: loop body
LE: loop exit
PB: predicated region body
PF: predicated region fallthrough
CT: control target
= control target key end

     0   :  { %8 = vsyncpa [#allocation3], 0  ;;  %s1016_s0 = inlined_call_operand.hbm [shape: bf16[16,128], index: 0, kind: input, shape index: {}]   ;;  %s1017_s1 = inlined_call_operand.hbm [shape: bf16[256,128], index: 1, kind: input, shape index: {}]   ;;  %s1018_s2 = inlined_call_operand.hbm [shape: f32[1,256], index: 2, kind: input, shape index: {}]   ;;  %s1019_s3 = inlined_call_operand.hbm [shape: f32[16,256], index: 3, kind: output, shape index: {}]  }
   0x1   :  { %9 = vsyncpa [#allocation6], 0 }
   0x2   :  { %11 = vsyncpa [#allocation6 + $0x1], 0 }
   0x3   :  { %12 = vsyncpa [#allocation4], 0 }
   0x4   :  { %14 = vsyncpa [#allocation4 + $0x1], 0  ;;  %s838_s12 = smov 0   ;;  %s840_s13 = smov 0  }
   0x5   :  { %s842_s14 = smov 0   ;;  %s844_s15 = smov 0  }
   0x6   :  { %s846_s16 = smov 0   ;;  %s848_s17 = smov 0  }
   0x7 LB: > { %s32_s18 = sadd.s32 1, %s806_s16  ;;  %s65_s19 = sadd.s32 1, %s798_s14  ;;  %s810_s17 = sphi %s848_s17, %s20_s17   ;;  %s806_s16 = sphi %s846_s16, %s1030_s16   ;;  %s802_s15 = sphi %s844_s15, %s1029_s15   ;;  %s798_s14 = sphi %s842_s14, %s1028_s14   ;;  %s794_s13 = sphi %s840_s13, %s1027_s13   ;;  %s790_s12 = sphi %s838_s12, %s1026_s12  }
   0x8   : > { %p34_p0 = scmp.ge.s32.totalorder %s32_s18, 2  ;;  %p72_p1 = scmp.ne.s32.totalorder %s798_s14, %s794_s13 }
   0x9   : > { %p73_p2 = scmp.eq.s32.totalorder %s810_s17, 0  ;;  %p492_p4 = scmp.ge.s32.totalorder %s810_s17, 2 }
   0xa   : > { %s1032_s18 = smov (%p34_p0, %s32_s18), 0  ;;  %p576_p6 = scmp.lt.s32.totalorder %s810_s17, 2 }
   0xb   : > { %p878_p3 = por %p73_p2, %p72_p1  ;;  %s62_s21 = ssub.s32 %s806_s16, %s1032_s18 }
   0xc   : > { %p63_p5 = scmp.eq.s32.totalorder %s62_s21, 0  ;;  %s173_s22 = sand.u32 1, %s810_s17  }
   0xd   : > { %s175_s23 = sand.u32 1, %s798_s14   ;;  %s540_s26 = sshll.u32 %s806_s16, 6 }
   0xe   : > { %s889_s24 = scalar_select %p63_p5, %s798_s14, %s65_s19  }
   0xf   : > { %s493_s25 = sshll.u32 %s175_s23, 6  ;;  %s182_s29 = scalar_lea.hbm %s1017_s1, %s540_s26 }
  0x10   : > { %s177_s30 = scalar_lea.vmem [#allocation5], %s493_s25  ;;  %s183_s5 = sshll.u32 %s182_s29, 4  ;;  %s184_s5 = int_to_ptr.hbm [resolvable:$true] %s183_s5 }
  0x11   : > { %s185_s4 = sshll.u32 %s177_s30, 4  ;;  %p899_p7 = pnand %p576_p6, %p878_p3  ;;  %s186_s4 = int_to_ptr.vmem [resolvable:$true] %s185_s4 }
  0x12   : > { %s903_s7 = scalar_lea.sflag [#allocation6], %s173_s22  ;;  %s812_s8 = smov 64  }
  0x13   : > { %s813_s9 = smov 4   ;;  %s912_s10 = sadd.s32 4294967295, %s810_s17  }
  0x14   : > { %567 = dma.hbm_to_vmem [thread:$0]  (!%p899_p7), %s184_s5, 1024, %s186_s4, %s903_s7, %s812_s8, %s812_s8, %s813_s9  }
  0x15   : > { %s489_s11 = sadd.s32 4294967294, %s810_s17   ;;  %p78_p8 = scmp.ne.s32.totalorder %s794_s13, %s790_s12 }
  0x16   : > { %p79_p9 = scmp.eq.s32.totalorder %s912_s10, 0  ;;  %p130_p10 = scmp.eq.s32.totalorder %s912_s10, 1 }
  0x17   : > { %p136_p11 = scmp.eq.s32.totalorder %s489_s11, 1  ;;  %p490_p12 = scmp.ge.s32.totalorder %s810_s17, 1 }
  0x18   : > { %p922_p13 = por %p79_p9, %p78_p8  ;;  %p929_p0 = por %p130_p10, %p72_p1 }
  0x19   : > { %p933_p2 = por %p136_p11, %p78_p8  ;;  %p143_p3 = scmp.lt.s32.totalorder %s810_s17, 3 }
  0x1a   : > { %s157_s26 = sshll.u32 %s1016_s0, 4  ;;  %s814_s28 = smov [#allocation2]   ;;  %s158_s26 = int_to_ptr.hbm [resolvable:$true] %s157_s26 }
  0x1b   : > { %p941_p5 = pnand %p490_p12, %p143_p3  ;;  %s159_s29 = sshll.u32 %s814_s28, 4  ;;  %s160_s29 = int_to_ptr.vmem [resolvable:$true] %s159_s29 }
  0x1c   : > { %s201_s5 = scalar_lea.hbm %s1018_s2, %s806_s16  ;;  %s198_s22 = scalar_lea.vmem [#allocation7], %s175_s23 }
  0x1d   : > { %p560_p1 = pneg %p941_p5  ;;  %s203_s11 = sshll.u32 %s201_s5, 4  ;;  %s204_s11 = int_to_ptr.hbm [resolvable:$true] %s203_s11 }
  0x1e   : > { %s205_s25 = sshll.u32 %s198_s22, 4  ;;  %214 = sbr.rel (%p941_p5) target bundleno = 245 (0xf5), region = 32  ;;  %s206_s25 = int_to_ptr.vmem [resolvable:$true] %s205_s25 }
  0x1f   : > { %p561_p6 = pnand %p560_p1, %p79_p9 }
  0x20   : > { %570 = dma.hbm_to_vmem [thread:$0]  (!%p899_p7), %s204_s11, 16, %s206_s25, %s903_s7  }
  0x21   : > { %563 = dma.hbm_to_vmem [thread:$0]  (!%p561_p6), %s158_s26, 128, %s160_s29, [#allocation3], %s812_s8, %s812_s8, %s813_s9  }
  0x23   : > { %777 = dma.done.wait (%p79_p9), [#allocation3], 128  }
  0x24   : > { %779 = vsyncadd (%p79_p9), [#allocation3], 4294967168  ;;  %s221_s23 = sand.u32 1, %s912_s10   ;;  %s969_s28 = sand.u32 1, %s794_s13  }
  0x25   : > { %s498_s30 = sshll.u32 %s969_s28, 6  ;;  %s222_s8 = scalar_lea.sflag [#allocation6], %s221_s23 }
  0x26   : > { %s225_s6 = scalar_lea.vmem [#allocation5], %s498_s30 }
  0x27   : > { %781 = dma.done.wait (%p922_p13), %s222_s8, 1040  }
  0x28   : > { %783 = vsyncadd (%p922_p13), %s222_s8, 4294966256  ;;  %v549_v0 = vld [vmem:[%s225_s6 + $0x38] sm:$0xff]  ;;  %s234_s7 = scalar_lea.vmem [#allocation7], %s969_s28  ;;  %v548_v1 = vld [vmem:[%s225_s6 + $0x30] sm:$0xff]  ;;  %s499_s9 = sshll.u32 %s969_s28, 4 }
  0x29   : > { %341 = vmatpush.bf16.xpose.msra.mxu0 %v549_v0  ;;  %v547_v2 = vld [vmem:[%s225_s6 + $0x28] sm:$0xff]  ;;  %v546_v3 = vld [vmem:[%s225_s6 + $0x20] sm:$0xff]  ;;  %v545_v4 = vld [vmem:[%s225_s6 + $0x18] sm:$0xff]  ;;  %s537_s10 = sshll.u32 %s802_s15, 3  ;;  %s261_s29 = scalar_lea.vmem [#allocation8], %s499_s9 }
  0x2a   : > { %v544_v5 = vld [vmem:[%s225_s6 + $0x10] sm:$0xff]  ;;  %v543_v6 = vld [vmem:[%s225_s6 + $0x8] sm:$0xff]  ;;  %v542_v7 = vld [vmem:[%s225_s6] sm:$0xff]  ;;  %s371_s27 = scalar_lea.hbm %s1019_s3, %s537_s10  ;;  %s372_s4 = sshll.u32 %s261_s29, 4  ;;  %s373_s4 = int_to_ptr.vmem [resolvable:$true] %s372_s4 }
  0x2b   : > { %v541_v8 = vld [vmem:[#allocation2] sm:$0xff]  ;;  %s374_s5 = sshll.u32 %s371_s27, 4  ;;  %s358_s11 = scalar_lea.sflag [#allocation4], %s969_s28  ;;  %s375_s5 = int_to_ptr.hbm [resolvable:$true] %s374_s5 }
  0x2c   : > { %v633_v9 = vld [vmem:[%s234_s7] ss:$0 sm:$0xff]  ;;  %s738_s22 = sshra.s32 %s375_s5, 4  ;;  %s744_s30 = scalar_lea.hbm %s1019_s3, 32  ;;  %s739_s22 = int_to_ptr.hbm [resolvable:$true] %s738_s22 }
  0x2d   : > { %s740_s15 = scalar_lea.hbm %s739_s22, 16  ;;  %p745_p10 = scmp.lt.s32.totalorder %s739_s22, %s1019_s3 }
  0x2e   : > { %p741_p7 = scmp.ne.s32.totalorder %s739_s22, %s740_s15  ;;  %p746_p11 = scmp.lt.s32.totalorder %s744_s30, %s740_s15 }
  0x30   : > { %p742_p8 = pnand %p741_p7, %p929_p0  ;;  %p747_p12 = por %p746_p11, %p745_p10 }
  0x31   : > { %342 = vmatpush.bf16.xpose.msra.mxu0 %v548_v1 }
  0x32   : > { %p743_p9 = pneg %p742_p8 }
  0x34   : > { %p748_p13 = pnand %p747_p12, %p743_p9 }
  0x39   : > { %343 = vmatpush.bf16.xpose.msra.mxu0 %v547_v2 }
  0x41   : > { %344 = vmatpush.bf16.xpose.msra.mxu0 %v546_v3 }
  0x49   : > { %345 = vmatpush.bf16.xpose.msra.mxu0 %v545_v4 }
  0x51   : > { %346 = vmatpush.bf16.xpose.msra.mxu0 %v544_v5 }
  0x59   : > { %347 = vmatpush.bf16.xpose.msra.mxu0 %v543_v6 }
  0x61   : > { %348 = vmatpush.bf16.xpose.msra.mxu0 %v542_v7 }
  0x68   : > { %349 = vmatmul.bf16.vlgmr.msra.gmra.mxu0 %v541_v8 }
  0xe5   : > { %v350_v10 = vpop.f32.mrf.mxu0 }
  0xe6   : > { %v351_v11 = vadd.f32 %v633_v9, %v350_v10 }
  0xe8   : > { %355 = vst [vmem:[%s261_s29] sm:$0xff] %v351_v11 }
  0xed   : > { %v352_v12 = vpop.f32.mrf.mxu0 }
  0xee   : > { %v353_v13 = vadd.f32 %v633_v9, %v352_v12 }
  0xf0   : > { %356 = vst [vmem:[%s261_s29 + $0x8] sm:$0xff] %v353_v13 }
  0xf1   : > { %751 = shalt.err (!%p748_p13)
}
  0xf2   : > { %s815_s28 = smov 128   ;;  %s816_s7 = smov 256  }
  0xf3   : > { %s817_s9 = smov 8  }
  0xf4   : > { %558 = dma.vmem_to_hbm [thread:$0]  (%p929_p0), %s373_s4, 256, %s375_s5, %s358_s11, %s815_s28, %s816_s7, %s817_s9  }
  0xf5 PF: > { %s389_s10 = sand.u32 1, %s790_s12   ;;  %p572_p3 = pnand %p492_p4, %p933_p2 }
  0xf6   : > { %s390_s19 = scalar_lea.sflag [#allocation4], %s389_s10 }
  0xf7   : > { %p573_p5 = pneg %p572_p3 }
  0xf9   : > { %785 = dma.done.wait (%p573_p5), %s390_s19, 256  }
  0xfa   : > { %787 = vsyncadd (%p573_p5), %s390_s19, 4294967040  ;;  %s20_s17 = sadd.s32 1, %s810_s17   ;;  %s1026_s12 = smov %s794_s13 }
  0xfb   : > { %p17_p1 = scmp.ge.s32.totalorder %s20_s17, 4   ;;  %s1027_s13 = smov %s798_s14 }
  0xfc   : > { %s1028_s14 = smov %s889_s24  ;;  %s1029_s15 = smov %s806_s16 }
  0xfd   : > { %s1030_s16 = smov %s1032_s18  ;;  %19 = sbr.rel (!%p17_p1) target bundleno = 7 (0x7), region = 94 }
 0x102   :  { %396 = vsyncpa [#allocation3], 1 }
 0x103   :  { %398 = vsyncpa [#allocation3 + $0x1], 1 }
 0x104   :  { %399 = vsyncpa [#allocation6], 1 }
 0x105   :  { %401 = vsyncpa [#allocation6 + $0x1], 1 }
 0x106   :  { %402 = vsyncpa [#allocation4], 1 }
 0x107   :  { %404 = vsyncpa [#allocation4 + $0x1], 1 }

</bundles_post_ra>
